<compile_context>
chip_gen: v6e
topology: v6e:2x2x1
jax: 0.10.0
libtpu: 0.0.40
codegen_flags: <defaults>
</compile_context>

<pallas_src>
import jax
import jax.numpy as jnp
import numpy as np
from jax.experimental import pallas as pl
from jax.experimental.pallas import tpu as pltpu


def _squeeze_kernel(x_ref, s_ref, o_ref):
    # x_ref : (1, c_blk, HW)    s_ref : (HW, n_blk)    o_ref : (1, c_blk, n_blk)
    o_ref[0] = jnp.dot(
        x_ref[0], s_ref[...], preferred_element_type=jnp.float32
    ).astype(o_ref.dtype)


def squeeze(x):
    B, C, H, W = x.shape
    assert H % 2 == 0 and W % 2 == 0, "H and W must be even"
    Hh, Wh = H // 2, W // 2
    HW = H * W
    itemsize = np.dtype(x.dtype).itemsize

    # ---- 0/1 permutation of the flattened (H*W) plane ----------------------
    # idx[n] = source flat index for output position n, where the output order
    # within a channel group is (i, j, h, w)  (i.e. channels 4c..4c+3, then
    # spatial), matching the reshape/permute/reshape of the PyTorch module.
    idx = np.arange(HW).reshape(Hh, 2, Wh, 2).transpose(1, 3, 0, 2).reshape(HW)
    s_np = np.zeros((HW, HW), dtype=np.float32)
    s_np[idx, np.arange(HW)] = 1.0
    s = jnp.asarray(s_np, dtype=x.dtype)          # perm matrix in x.dtype

    # ---- block-size selection ----------------------------------------------
    # Channel block: (8,128) rule -> c_blk == C or c_blk % 8 == 0.
    in_cap = max(1, (2 << 20) // (HW * itemsize))            # ~2 MiB input slab
    c_cands = [d for d in range(1, C + 1)
               if C % d == 0 and (d == C or d % 8 == 0)]
    fitting = [d for d in c_cands if d <= in_cap]
    c_blk = max(fitting) if fitting else min(c_cands)

    # Column block of S: n_blk == HW, or a divisor of HW that is a multiple
    # of 128 (keeps stores unmasked) and keeps the S slab within ~8 MiB.
    s_cap = max(1, (8 << 20) // (HW * itemsize))
    if HW <= s_cap:
        n_blk = HW
    else:
        n_cands = [d for d in range(128, HW + 1, 128)
                   if HW % d == 0 and d <= s_cap]
        n_blk = max(n_cands) if n_cands else HW

    grid = (B, C // c_blk, HW // n_blk)

    # Explicit VMEM budget (double-buffered in/out/S blocks + headroom).
    vmem_limit = 2 * (c_blk * HW + c_blk * n_blk + HW * n_blk) * itemsize
    vmem_limit = int(min(max(vmem_limit + (4 << 20), 16 << 20), 64 << 20))

    x_flat = x.reshape(B, C, HW)                  # free (contiguous) reshape

    out_flat = pl.pallas_call(
        _squeeze_kernel,
        out_shape=jax.ShapeDtypeStruct((B, C, HW), x.dtype),
        grid_spec=pltpu.PrefetchScalarGridSpec(
            num_scalar_prefetch=0,
            grid=grid,
            in_specs=[
                pl.BlockSpec((1, c_blk, HW), lambda b, cb, nb: (b, cb, 0)),
                pl.BlockSpec((HW, n_blk), lambda b, cb, nb: (0, nb)),
            ],
            out_specs=pl.BlockSpec((1, c_blk, n_blk),
                                   lambda b, cb, nb: (b, cb, nb)),
        ),
        compiler_params=pltpu.CompilerParams(
            dimension_semantics=("parallel", "parallel", "parallel"),
            vmem_limit_bytes=vmem_limit,
        ),
    )(x_flat, s)

    # (B, C, 4*Hh*Wh) -> (B, 4C, Hh, Wh): free (contiguous) reshape.
    return out_flat.reshape(B, 4 * C, Hh, Wh)


def squeeze_ref(x):
    """Pure-JAX reference matching the PyTorch module exactly."""
    B, C, H, W = x.shape
    y = x.reshape(B, C, H // 2, 2, W // 2, 2)
    y = jnp.transpose(y, (0, 1, 3, 5, 2, 4))
    return y.reshape(B, 4 * C, H // 2, W // 2)


if __name__ == "__main__":
    key = jax.random.PRNGKey(0)
    x = jax.random.normal(key, (2, 4, 16, 16), dtype=jnp.float32)

    out = jax.block_until_ready(squeeze(x))

    ref = squeeze_ref(x)
    np.testing.assert_allclose(np.asarray(out), np.asarray(ref), rtol=0, atol=0)

    print("KERNEL_OK")
</pallas_src>

<mosaic_0001>
module attributes {stable_mosaic.version = 11 : i64} {
  func.func @_squeeze_kernel(%arg0: i32, %arg1: i32, %arg2: i32, %arg3: memref<1x4x256xf32, #tpu.memory_space<vmem>>, %arg4: memref<256x256xf32, #tpu.memory_space<vmem>>, %arg5: memref<1x4x256xf32, #tpu.memory_space<vmem>>) attributes {dimension_semantics = [#tpu.dimension_semantics<parallel>, #tpu.dimension_semantics<parallel>, #tpu.dimension_semantics<parallel>], iteration_bounds = array<i64: 2, 1, 1>, scalar_prefetch = 0 : i64, scratch_operands = 0 : i64, tpu.core_type = #tpu.core_type<tc>, window_params = [{transform_indices = @transform_0, window_bounds = array<i64: 1, 4, 256>}, {transform_indices = @transform_1, window_bounds = array<i64: 256, 256>}, {transform_indices = @transform_2, window_bounds = array<i64: 1, 4, 256>}]} {
    %c0 = arith.constant 0 : index
    %c0_0 = arith.constant 0 : index
    %c0_1 = arith.constant 0 : index
    %0 = vector.load %arg3[%c0, %c0_0, %c0_1] : memref<1x4x256xf32, #tpu.memory_space<vmem>>, vector<1x4x256xf32>
    %1 = vector.shape_cast %0 : vector<1x4x256xf32> to vector<4x256xf32>
    %c0_2 = arith.constant 0 : index
    %c0_3 = arith.constant 0 : index
    %2 = vector.load %arg4[%c0_2, %c0_3] : memref<256x256xf32, #tpu.memory_space<vmem>>, vector<256x256xf32>
    %cst = arith.constant dense<0.000000e+00> : vector<4x256xf32>
    %3 = tpu.matmul %1, %2, %cst {dimension_numbers = #tpu.dot_dimension_numbers<[1], [0], [0], [1], [0, 0, 1, 1], [], []>} : vector<4x256xf32>, vector<256x256xf32>, vector<4x256xf32> -> vector<4x256xf32>
    %c0_4 = arith.constant 0 : index
    %c0_5 = arith.constant 0 : index
    %c0_6 = arith.constant 0 : index
    %4 = vector.load %arg5[%c0_4, %c0_5, %c0_6] : memref<1x4x256xf32, #tpu.memory_space<vmem>>, vector<1x4x256xf32>
    %5 = vector.shape_cast %4 : vector<1x4x256xf32> to vector<4x256xf32>
    %6 = vector.shape_cast %3 : vector<4x256xf32> to vector<1x4x256xf32>
    tpu.vector_store %arg5[%c0_4, %c0_5, %c0_6], %6 {strides = array<i32>} : memref<1x4x256xf32, #tpu.memory_space<vmem>>, vector<1x4x256xf32>,
    return
  }
  func.func @transform_0(%arg0: i32, %arg1: i32, %arg2: i32) -> (i32, i32, i32) {
    %c0_i32 = arith.constant 0 : i32
    %c0_i32_0 = arith.constant 0 : i32
    return %arg0, %arg1, %c0_i32 : i32, i32, i32
  }
  func.func @transform_1(%arg0: i32, %arg1: i32, %arg2: i32) -> (i32, i32) {
    %c0_i32 = arith.constant 0 : i32
    %c0_i32_0 = arith.constant 0 : i32
    return %c0_i32, %arg2 : i32, i32
  }
  func.func @transform_2(%arg0: i32, %arg1: i32, %arg2: i32) -> (i32, i32, i32) {
    %c0_i32 = arith.constant 0 : i32
    return %arg0, %arg1, %arg2 : i32, i32, i32
  }
}

</mosaic_0001>

<bundles_post_ra>
// kernel: tpu_custom_call.1
= control target key start
LH: loop header
LB: loop body
LE: loop exit
PB: predicated region body
PF: predicated region fallthrough
CT: control target
= control target key end

     0   :  { %7 = vsyncpa [#allocation3], 0  ;;  %s910_s0 = inlined_call_operand.hbm [shape: f32[2,4,256], index: 0, kind: input, shape index: {}]   ;;  %s911_s1 = inlined_call_operand.hbm [shape: f32[256,256], index: 1, kind: input, shape index: {}]   ;;  %s912_s2 = inlined_call_operand.hbm [shape: f32[2,4,256], index: 2, kind: output, shape index: {}]  }
   0x1   :  { %9 = vsyncpa [#allocation3 + $0x1], 0 }
   0x2   :  { %10 = vsyncpa [#allocation6], 0 }
   0x3   :  { %11 = vsyncpa [#allocation4], 0 }
   0x4   :  { %13 = vsyncpa [#allocation4 + $0x1], 0  ;;  %s731_s9 = smov 0   ;;  %s733_s10 = smov 0  }
   0x5   :  { %s735_s11 = smov 0   ;;  %s737_s12 = smov 0  }
   0x6   :  { %s739_s13 = smov 0   ;;  %s741_s14 = smov 0  }
   0x7 LB: > { %s476_s15 = sadd.s32 4294967295, %s709_s14   ;;  %s477_s16 = sadd.s32 4294967294, %s709_s14   ;;  %s709_s14 = sphi %s741_s14, %s19_s14   ;;  %s705_s13 = sphi %s739_s13, %s930_s13   ;;  %s701_s12 = sphi %s737_s12, %s929_s12   ;;  %s697_s11 = sphi %s735_s11, %s928_s11   ;;  %s693_s10 = sphi %s733_s10, %s927_s10   ;;  %s689_s9 = sphi %s731_s9, %s926_s9  }
   0x8   : > { %p60_p0 = scmp.ne.s32.totalorder %s693_s10, %s689_s9  ;;  %p765_p1 = scmp.eq.s32.totalorder %s476_s15, 0 }
   0x9   : > { %p769_p2 = scmp.eq.s32.totalorder %s476_s15, 1  ;;  %p120_p3 = scmp.eq.s32.totalorder %s477_s16, 1 }
   0xa   : > { %p775_p4 = por %p765_p1, %p60_p0  ;;  %p478_p5 = scmp.ge.s32.totalorder %s709_s14, 1 }
   0xb   : > { %p780_p6 = por %p120_p3, %p60_p0  ;;  %p127_p7 = scmp.lt.s32.totalorder %s709_s14, 3 }
   0xc   : > { %s916_s19 = scalar_select %p775_p4, 1, 0 }
   0xd   : > { %s917_s20 = scalar_select %p780_p6, 1, 0 }
   0xe   : > { %p785_p8 = pnand %p478_p5, %p127_p7  ;;  %s711_s22 = smov [#allocation5]  }
   0xf   : > { %s142_s23 = sshll.u32 %s711_s22, 4  ;;  %s38_s25 = sadd.s32 1, %s705_s13  ;;  %s143_s23 = int_to_ptr.vmem [resolvable:$true] %s142_s23 }
  0x10   : > { %p503_p9 = pneg %p785_p8  ;;  %s582_s26 = scalar_lea.vmem %s143_s23, 8192 }
  0x11   : > { %p583_p13 = scmp.ne.s32.totalorder %s143_s23, %s582_s26  ;;  %p590_p5 = scmp.lt.s32.totalorder %s143_s23, %s143_s23 }
  0x12   : > { %p794_p11 = pnand %p503_p9, %p765_p1  ;;  %p591_p7 = scmp.lt.s32.totalorder %s582_s26, %s582_s26 }
  0x14   : > { %p573_p12 = pneg %p794_p11  ;;  %p592_p6 = por %p591_p7, %p590_p5 }
  0x16   : > { %p585_p0 = pnand %p583_p13, %p573_p12 }
  0x18   : > { %p586_p3 = pneg %p585_p0 }
  0x1a   : > { %p593_p4 = pnand %p592_p6, %p586_p3 }
  0x1c   : > { %596 = shalt.err (!%p593_p4)
}
  0x1d   : > { %s712_s27 = smov 256   ;;  %s713_s28 = smov 16  }
  0x1e   : > { %506 = dma.hbm_to_vmem [thread:$0]  (!%p794_p11), %s911_s1, 8192, %s143_s23, [#allocation6], %s712_s27, %s712_s27, %s713_s28  }
  0x1f   : > { %p40_p6 = scmp.ge.s32.totalorder %s38_s25, 2  ;;  %s47_s3 = sadd.s32 1, %s697_s11 }
  0x20   : > { %p54_p4 = scmp.ne.s32.totalorder %s697_s11, %s693_s10  ;;  %p55_p9 = scmp.eq.s32.totalorder %s709_s14, 0 }
  0x21   : > { %s932_s25 = smov (%p40_p6, %s38_s25), 0  ;;  %p516_p0 = scmp.lt.s32.totalorder %s709_s14, 2 }
  0x22   : > { %p812_p12 = por %p55_p9, %p54_p4  ;;  %p818_p13 = por %p769_p2, %p54_p4 }
  0x23   : > { %s42_s6 = ssub.s32 %s705_s13, %s932_s25  ;;  %s156_s7 = sand.u32 1, %s697_s11  }
  0x24   : > { %p45_p11 = scmp.eq.s32.totalorder %s42_s6, 0  ;;  %s481_s8 = sshll.u32 %s156_s7, 3 }
  0x25   : > { %s493_s16 = sshll.u32 %s705_s13, 7  ;;  %s160_s26 = scalar_lea.vmem [#allocation2], %s481_s8 }
  0x26   : > { %s827_s15 = scalar_select %p45_p11, %s697_s11, %s47_s3  }
  0x27   : > { %s168_s24 = scalar_lea.hbm %s910_s0, %s493_s16  ;;  %s170_s27 = sshll.u32 %s160_s26, 4  ;;  %s171_s27 = int_to_ptr.vmem [resolvable:$true] %s170_s27 }
  0x28   : > { %p835_p2 = pnand %p516_p0, %p812_p12  ;;  %s157_s28 = scalar_lea.sflag [#allocation3], %s156_s7 }
  0x29   : > { %s610_s29 = scalar_lea.vmem %s171_s27, 128  ;;  %s714_s30 = smov [#allocation2]  }
  0x2a   : > { %p599_p3 = pneg %p835_p2  ;;  %p611_p5 = scmp.ne.s32.totalorder %s171_s27, %s610_s29 }
  0x2b   : > { %s615_s3 = sshll.u32 %s714_s30, 4  ;;  %s616_s3 = int_to_ptr.vmem [resolvable:$false] %s615_s3 }
  0x2c   : > { %p613_p7 = pnand %p611_p5, %p599_p3  ;;  %s617_s6 = scalar_lea.vmem %s616_s3, 256 }
  0x2d   : > { %p618_p4 = scmp.lt.s32.totalorder %s171_s27, %s616_s3  ;;  %p619_p9 = scmp.lt.s32.totalorder %s617_s6, %s610_s29 }
  0x2e   : > { %p614_p6 = pneg %p613_p7 }
  0x2f   : > { %p620_p11 = por %p619_p9, %p618_p4 }
  0x31   : > { %p621_p10 = pnand %p620_p11, %p614_p6 }
  0x33   : > { %624 = shalt.err (!%p621_p10)
}
  0x34   : > { %510 = dma.hbm_to_vmem [thread:$0]  (!%p835_p2), %s168_s24, 128, %s171_s27, %s157_s28  }
  0x35   : > { %179 = sbr.rel (%p785_p8) target bundleno = 336 (0x150), region = 28  ;;  %s846_s4 = sand.u32 (!%p785_p8), 1, %s693_s10  }
  0x36   : > { %s485_s7 = sshll.u32 (!%p785_p8), %s846_s4, 3  ;;  %s182_s8 = scalar_lea.sflag (!%p785_p8), [#allocation3], %s846_s4 }
  0x37   : > { %s852_s16 = scalar_lea.vmem (!%p785_p8), [#allocation2], %s485_s7  ;;  %p923_p12 = scmp.ne.s32.totalorder (!%p785_p8), %s916_s19, 0 }
  0x3a   : > { %676 = dma.done.wait (%p923_p12), %s182_s8, 128  }
  0x3b   : > { %678 = vsyncadd (%p923_p12), %s182_s8, 4294967168 }
  0x3c   : > { %680 = dma.done.wait (%p765_p1), [#allocation6], 8192  }
  0x3d   : > { %682 = vsyncadd (%p765_p1), [#allocation6], 4294959104  ;;  %v244_v0 = vld [vmem:[#allocation5 + $0xf8] sm:$0xff]  ;;  %v243_v1 = vld [vmem:[#allocation5 + $0xf0] sm:$0xff]  ;;  %s494_s17 = sshll.u32 %s701_s12, 7  ;;  %s209_s19 = scalar_lea.vmem [#allocation7], %s485_s7 }
  0x3e   : > { %v242_v2 = vld [vmem:[#allocation5 + $0xe8] sm:$0xff]  ;;  %280 = vmatprep.subr.mxu0 %v244_v0  ;;  %v241_v3 = vld [vmem:[#allocation5 + $0xe0] sm:$0xff]  ;;  %v240_v4 = vld [vmem:[#allocation5 + $0xd8] sm:$0xff]  ;;  %s375_s21 = sshll.u32 %s209_s19, 4  ;;  %s373_s24 = scalar_lea.hbm %s912_s2, %s494_s17  ;;  %s376_s21 = int_to_ptr.vmem [resolvable:$true] %s375_s21 }
  0x3f   : > { %281 = vmatpush1.msra.mxu0 %v243_v1  ;;  %v239_v5 = vld [vmem:[#allocation5 + $0xd0] sm:$0xff]  ;;  %v238_v6 = vld [vmem:[#allocation5 + $0xc8] sm:$0xff]  ;;  %v237_v7 = vld [vmem:[#allocation5 + $0xc0] sm:$0xff]  ;;  %s357_s26 = scalar_lea.sflag [#allocation4], %s846_s4  ;;  %s625_s27 = scalar_lea.vmem %s376_s21, 128 }
  0x40   : > { %282 = vmatprep.subr.mxu0 %v242_v2  ;;  %v236_v8 = vld [vmem:[#allocation5 + $0xb8] sm:$0xff]  ;;  %v235_v9 = vld [vmem:[#allocation5 + $0xb0] sm:$0xff]  ;;  %v234_v10 = vld [vmem:[#allocation5 + $0xa8] sm:$0xff]  ;;  %p626_p1 = scmp.ne.s32.totalorder %s376_s21, %s625_s27  ;;  %s715_s18 = smov [#allocation7]  }
  0x41   : > { %283 = vmatpush1.msra.mxu0 %v241_v3  ;;  %v233_v11 = vld [vmem:[#allocation5 + $0xa0] sm:$0xff]  ;;  %v232_v12 = vld [vmem:[#allocation5 + $0x98] sm:$0xff]  ;;  %v231_v13 = vld [vmem:[#allocation5 + $0x90] sm:$0xff]  ;;  %s629_s28 = sshll.u32 %s715_s18, 4  ;;  %s630_s28 = int_to_ptr.vmem [resolvable:$false] %s629_s28 }
  0x42   : > { %284 = vmatprep.subr.mxu0 %v240_v4  ;;  %v230_v14 = vld [vmem:[#allocation5 + $0x88] sm:$0xff]  ;;  %v229_v15 = vld [vmem:[#allocation5 + $0x80] sm:$0xff]  ;;  %v228_v16 = vld [vmem:[#allocation5 + $0x78] sm:$0xff]  ;;  %p627_p8 = pnand %p626_p1, %p818_p13  ;;  %s631_s12 = scalar_lea.vmem %s630_s28, 256 }
  0x43   : > { %285 = vmatpush1.msra.mxu0 %v239_v5  ;;  %v227_v17 = vld [vmem:[#allocation5 + $0x70] sm:$0xff]  ;;  %v226_v18 = vld [vmem:[#allocation5 + $0x68] sm:$0xff]  ;;  %v225_v19 = vld [vmem:[#allocation5 + $0x60] sm:$0xff]  ;;  %p632_p0 = scmp.lt.s32.totalorder %s376_s21, %s630_s28  ;;  %p633_p2 = scmp.lt.s32.totalorder %s631_s12, %s625_s27 }
  0x44   : > { %286 = vmatprep.subr.mxu0 %v238_v6  ;;  %v224_v20 = vld [vmem:[#allocation5 + $0x58] sm:$0xff]  ;;  %v223_v21 = vld [vmem:[#allocation5 + $0x50] sm:$0xff]  ;;  %v222_v22 = vld [vmem:[#allocation5 + $0x48] sm:$0xff]  ;;  %p628_p10 = pneg %p627_p8 }
  0x45   : > { %287 = vmatpush1.msra.mxu0 %v237_v7  ;;  %v221_v23 = vld [vmem:[#allocation5 + $0x40] sm:$0xff]  ;;  %v863_v24 = vld [vmem:[%s852_s16] sm:$0xff]  ;;  %v218_v28 = vld [vmem:[#allocation5 + $0x28] sm:$0xff]  ;;  %p634_p3 = por %p633_p2, %p632_p0 }
  0x46   : > { %288 = vmatprep.subr.mxu0 %v236_v8  ;;  %v220_v25 = vld [vmem:[#allocation5 + $0x38] sm:$0xff]  ;;  %v278_v26 = vcombine.high %v863_v24, %v863_v24  ;;  %v219_v27 = vld [vmem:[#allocation5 + $0x30] sm:$0xff]  ;;  %v217_v29 = vld [vmem:[#allocation5 + $0x20] sm:$0xff] }
  0x47   : > { %289 = vmatpush1.msra.mxu0 %v235_v9  ;;  %v216_v30 = vld [vmem:[#allocation5 + $0x18] sm:$0xff]  ;;  %v215_v31 = vld [vmem:[#allocation5 + $0x10] sm:$0xff]  ;;  %v214_v32 = vld [vmem:[#allocation5 + $0x8] sm:$0xff]  ;;  %p635_p5 = pnand %p634_p3, %p628_p10 }
  0x48   : > { %290 = vmatprep.subr.mxu0 %v234_v10  ;;  %344 = vmatprep.mubr.f32.mxu0 %v278_v26  ;;  %v213_v33 = vld [vmem:[#allocation5] sm:$0xff]  ;;  %v276_v34 = vld [vmem:[#allocation5 + $0x1f8] sm:$0xff]  ;;  %v275_v35 = vld [vmem:[#allocation5 + $0x1f0] sm:$0xff] }
  0x49   : > { %291 = vmatpush1.msra.mxu0 %v233_v11  ;;  %v274_v36 = vld [vmem:[#allocation5 + $0x1e8] sm:$0xff]  ;;  %v273_v37 = vld [vmem:[#allocation5 + $0x1e0] sm:$0xff]  ;;  %v272_v38 = vld [vmem:[#allocation5 + $0x1d8] sm:$0xff] }
  0x4a   : > { %292 = vmatprep.subr.mxu0 %v232_v12  ;;  %v271_v39 = vld [vmem:[#allocation5 + $0x1d0] sm:$0xff]  ;;  %v270_v40 = vld [vmem:[#allocation5 + $0x1c8] sm:$0xff]  ;;  %v269_v41 = vld [vmem:[#allocation5 + $0x1c0] sm:$0xff] }
  0x4b   : > { %293 = vmatpush1.msra.mxu0 %v231_v13  ;;  %v268_v42 = vld [vmem:[#allocation5 + $0x1b8] sm:$0xff]  ;;  %v267_v43 = vld [vmem:[#allocation5 + $0x1b0] sm:$0xff]  ;;  %v266_v44 = vld [vmem:[#allocation5 + $0x1a8] sm:$0xff] }
  0x4c   : > { %294 = vmatprep.subr.mxu0 %v230_v14  ;;  %v265_v45 = vld [vmem:[#allocation5 + $0x1a0] sm:$0xff]  ;;  %v264_v46 = vld [vmem:[#allocation5 + $0x198] sm:$0xff]  ;;  %v263_v47 = vld [vmem:[#allocation5 + $0x190] sm:$0xff] }
  0x4d   : > { %295 = vmatpush1.msra.mxu0 %v229_v15  ;;  %v262_v48 = vld [vmem:[#allocation5 + $0x188] sm:$0xff]  ;;  %v261_v49 = vld [vmem:[#allocation5 + $0x180] sm:$0xff]  ;;  %v260_v50 = vld [vmem:[#allocation5 + $0x178] sm:$0xff] }
  0x4e   : > { %296 = vmatprep.subr.mxu0 %v228_v16  ;;  %v259_v51 = vld [vmem:[#allocation5 + $0x170] sm:$0xff]  ;;  %v258_v52 = vld [vmem:[#allocation5 + $0x168] sm:$0xff]  ;;  %v257_v53 = vld [vmem:[#allocation5 + $0x160] sm:$0xff] }
  0x4f   : > { %297 = vmatpush1.msra.mxu0 %v227_v17  ;;  %v256_v54 = vld [vmem:[#allocation5 + $0x158] sm:$0xff]  ;;  %v255_v55 = vld [vmem:[#allocation5 + $0x150] sm:$0xff]  ;;  %v254_v56 = vld [vmem:[#allocation5 + $0x148] sm:$0xff] }
  0x50   : > { %298 = vmatprep.subr.mxu0 %v226_v18  ;;  %v253_v57 = vld [vmem:[#allocation5 + $0x140] sm:$0xff]  ;;  %v252_v58 = vld [vmem:[#allocation5 + $0x138] sm:$0xff]  ;;  %v251_v59 = vld [vmem:[#allocation5 + $0x130] sm:$0xff] }
  0x51   : > { %299 = vmatpush1.msra.mxu0 %v225_v19  ;;  %v250_v60 = vld [vmem:[#allocation5 + $0x128] sm:$0xff]  ;;  %v249_v61 = vld [vmem:[#allocation5 + $0x120] sm:$0xff]  ;;  %v248_v62 = vld [vmem:[#allocation5 + $0x118] sm:$0xff] }
  0x52   : > { %300 = vmatprep.subr.mxu0 %v224_v20  ;;  %v247_v63 = vld [vmem:[#allocation5 + $0x110] sm:$0xff]  ;;  %v246_v0 = vld [vmem:[#allocation5 + $0x108] sm:$0xff]  ;;  %v245_v1 = vld [vmem:[#allocation5 + $0x100] sm:$0xff] }
  0x53   : > { %301 = vmatpush1.msra.mxu0 %v223_v21 }
  0x54   : > { %302 = vmatprep.subr.mxu0 %v222_v22 }
  0x55   : > { %303 = vmatpush1.msra.mxu0 %v221_v23 }
  0x56   : > { %304 = vmatprep.subr.mxu0 %v220_v25 }
  0x57   : > { %305 = vmatpush1.msra.mxu0 %v219_v27 }
  0x58   : > { %306 = vmatprep.subr.mxu0 %v218_v28 }
  0x59   : > { %307 = vmatpush1.msra.mxu0 %v217_v29 }
  0x5a   : > { %308 = vmatprep.subr.mxu0 %v216_v30 }
  0x5b   : > { %309 = vmatpush1.msra.mxu0 %v215_v31 }
  0x5c   : > { %310 = vmatprep.subr.mxu0 %v214_v32 }
  0x5d   : > { %311 = vmatpush1.msra.mxu0 %v213_v33 }
  0x5e   : > { %312 = vmatprep.subr.mxu0 %v276_v34 }
  0x5f   : > { %313 = vmatpush2.msra.mxu0 %v275_v35 }
  0x60   : > { %314 = vmatprep.subr.mxu0 %v274_v36 }
  0x61   : > { %315 = vmatpush2.msra.mxu0 %v273_v37 }
  0x62   : > { %316 = vmatprep.subr.mxu0 %v272_v38 }
  0x63   : > { %317 = vmatpush2.msra.mxu0 %v271_v39 }
  0x64   : > { %318 = vmatprep.subr.mxu0 %v270_v40 }
  0x65   : > { %319 = vmatpush2.msra.mxu0 %v269_v41 }
  0x66   : > { %320 = vmatprep.subr.mxu0 %v268_v42 }
  0x67   : > { %321 = vmatpush2.msra.mxu0 %v267_v43 }
  0x68   : > { %322 = vmatprep.subr.mxu0 %v266_v44 }
  0x69   : > { %323 = vmatpush2.msra.mxu0 %v265_v45 }
  0x6a   : > { %324 = vmatprep.subr.mxu0 %v264_v46 }
  0x6b   : > { %325 = vmatpush2.msra.mxu0 %v263_v47 }
  0x6c   : > { %326 = vmatprep.subr.mxu0 %v262_v48 }
  0x6d   : > { %327 = vmatpush2.msra.mxu0 %v261_v49 }
  0x6e   : > { %328 = vmatprep.subr.mxu0 %v260_v50 }
  0x6f   : > { %329 = vmatpush2.msra.mxu0 %v259_v51 }
  0x70   : > { %330 = vmatprep.subr.mxu0 %v258_v52 }
  0x71   : > { %331 = vmatpush2.msra.mxu0 %v257_v53 }
  0x72   : > { %332 = vmatprep.subr.mxu0 %v256_v54 }
  0x73   : > { %333 = vmatpush2.msra.mxu0 %v255_v55 }
  0x74   : > { %334 = vmatprep.subr.mxu0 %v254_v56 }
  0x75   : > { %335 = vmatpush2.msra.mxu0 %v253_v57 }
  0x76   : > { %336 = vmatprep.subr.mxu0 %v252_v58 }
  0x77   : > { %337 = vmatpush2.msra.mxu0 %v251_v59 }
  0x78   : > { %338 = vmatprep.subr.mxu0 %v250_v60 }
  0x79   : > { %339 = vmatpush2.msra.mxu0 %v249_v61 }
  0x7a   : > { %340 = vmatprep.subr.mxu0 %v248_v62 }
  0x7b   : > { %341 = vmatpush2.msra.mxu0 %v247_v63 }
  0x7c   : > { %342 = vmatprep.subr.mxu0 %v246_v0 }
  0x7d   : > { %343 = vmatpush2.msra.mxu0 %v245_v1 }
  0x7e   : > { %345 = vmatmul.mubr.f32.vlgmr.msra.gmra.mxu0 %v863_v24 }
 0x13e   : > { %v346_v2 = vpop.f32.mrf.mxu0 }
 0x140   : > { %v348_v3 = vpop.f32.mrf.mxu0 }
 0x141   : > { %v353_v4 = vcombine.low %v346_v2, %v348_v3 }
 0x143   : > { %355 = vst [vmem:[%s209_s19] sm:$0xff] %v353_v4 }
 0x144   : > { %638 = shalt.err (!%p635_p5)
}
 0x145   : > { %s639_s29 = scalar_lea.hbm %s373_s24, 128  ;;  %s643_s6 = scalar_lea.hbm %s912_s2, 256 }
 0x146   : > { %p640_p7 = scmp.ne.s32.totalorder %s373_s24, %s639_s29  ;;  %p644_p9 = scmp.lt.s32.totalorder %s373_s24, %s912_s2 }
 0x147   : > { %p645_p11 = scmp.lt.s32.totalorder %s643_s6, %s639_s29 }
 0x148   : > { %p641_p6 = pnand %p640_p7, %p818_p13 }
 0x149   : > { %p646_p12 = por %p645_p11, %p644_p9 }
 0x14a   : > { %p642_p4 = pneg %p641_p6 }
 0x14c   : > { %p647_p1 = pnand %p646_p12, %p642_p4 }
 0x14e   : > { %650 = shalt.err (!%p647_p1)
}
 0x14f   : > { %501 = dma.vmem_to_hbm [thread:$0]  (%p818_p13), %s376_s21, 128, %s373_s24, %s357_s26  }
 0x150 PF: > { %s387_s8 = sand.u32 1, %s689_s9   ;;  %p924_p8 = scmp.ne.s32.totalorder %s917_s20, 0 }
 0x151   : > { %p925_p10 = scmp.ge.s32.totalorder %s709_s14, 2  ;;  %s388_s16 = scalar_lea.sflag [#allocation4], %s387_s8 }
 0x153   : > { %p512_p0 = pnand %p925_p10, %p924_p8 }
 0x155   : > { %p513_p2 = pneg %p512_p0 }
 0x157   : > { %684 = dma.done.wait (%p513_p2), %s388_s16, 128  }
 0x158   : > { %686 = vsyncadd (%p513_p2), %s388_s16, 4294967168  ;;  %s19_s14 = sadd.s32 1, %s709_s14   ;;  %s926_s9 = smov %s693_s10 }
 0x159   : > { %p16_p3 = scmp.ge.s32.totalorder %s19_s14, 4   ;;  %s927_s10 = smov %s697_s11 }
 0x15a   : > { %s928_s11 = smov %s827_s15  ;;  %s929_s12 = smov %s705_s13 }
 0x15b   : > { %s930_s13 = smov %s932_s25  ;;  %18 = sbr.rel (!%p16_p3) target bundleno = 7 (0x7), region = 78 }
 0x160   :  { %393 = vsyncpa [#allocation3], 1 }
 0x161   :  { %395 = vsyncpa [#allocation3 + $0x1], 1 }
 0x162   :  { %396 = vsyncpa [#allocation6], 1 }
 0x163   :  { %397 = vsyncpa [#allocation4], 1 }
 0x164   :  { %399 = vsyncpa [#allocation4 + $0x1], 1 }

</bundles_post_ra>
